<compile_context>
chip_gen: v7x
topology: tpu7x:2x2x1
jax: 0.10.0
libtpu: 0.0.40
codegen_flags: <defaults>
</compile_context>

<pallas_src>
import functools

import jax
import jax.numpy as jnp
from jax.experimental import pallas as pl
from jax.experimental.pallas import tpu as pltpu

_LANE = 128


def _round_up(x, m):
    return ((x + m - 1) // m) * m


def _cdiv(a, b):
    return (a + b - 1) // b


def _regressor_kernel(x_ref, *refs, n_layers, precision):
    """MLP forward on one batch tile.

    x_ref : (tile_b, input_dim)   activations in natural layout (batch on sublanes)
    refs  : (w1, b1, ..., wL, bL, out_ref)
            first  w1 : (h0, input_dim)  compute_dtype (contracted against x's input_dim)
            hidden w_i: (out_i, in_i)    compute_dtype (PyTorch Linear.weight layout)
            biases b_i: (out_i, 1)       f32
            final  wL : (h_last, 1)      f32 column  (VPU multiply + sublane reduce)
            final  bL : (1, 1)           f32
    out   : (1, tile_b)           lane-dense f32 output slab
    """
    o_ref = refs[-1]
    wb = refs[:-1]

    x = x_ref[...]

    if n_layers == 1:
        # Degenerate single Linear(input_dim -> 1).
        w = wb[0][...]                       # (1, input_dim) f32
        b = wb[1][...]                       # (1, 1) f32
        out = jax.lax.dot_general(
            w, x.astype(w.dtype),
            dimension_numbers=(((1,), (1,)), ((), ())),
            preferred_element_type=jnp.float32,
            precision=precision) + b
        o_ref[...] = out.astype(o_ref.dtype)
        return

    # First hidden layer: contract W1's input_dim against x's input_dim directly
    # (no explicit transpose of x).  Result is feature-major (h0, tile_b).
    w0 = wb[0][...]
    b0 = wb[1][...]
    h = jax.lax.dot_general(
        w0, x.astype(w0.dtype),
        dimension_numbers=(((1,), (1,)), ((), ())),
        preferred_element_type=jnp.float32,
        precision=precision) + b0
    h = jnp.maximum(h, 0.0)

    # Remaining hidden layers: MXU matmuls with f32 accumulation; bias + ReLU on
    # the VPU in f32.
    for l in range(1, n_layers - 1):
        w = wb[2 * l][...]
        b = wb[2 * l + 1][...]
        h = jnp.dot(w, h.astype(w.dtype),
                    preferred_element_type=jnp.float32,
                    precision=precision) + b
        h = jnp.maximum(h, 0.0)

    # Final Linear(h_last -> 1): elementwise multiply + sublane reduction instead
    # of a nearly-empty N=1 MXU pass.
    w_last = wb[-2][...]                     # (h_last, 1) f32
    b_last = wb[-1][...]                     # (1, 1) f32
    out = jnp.sum(h * w_last, axis=0, keepdims=True) + b_last
    o_ref[...] = out.astype(o_ref.dtype)


def regressor_forward(x, params, *, block_batch=2048, compute_dtype=jnp.bfloat16,
                      precision=None, vmem_limit_bytes=32 * 1024 * 1024):
    """Forward pass of the Regressor MLP.

    x      : (batch, input_dim) float array (streamed as-is; pass bf16 to halve bytes).
    params : list of (W, b) in PyTorch layout: W (out_dim, in_dim), b (out_dim,).
             The last layer must have out_dim == 1.
    Returns: (batch, 1) float32, same forward semantics as the PyTorch module.
    """
    batch, input_dim = x.shape
    n_layers = len(params)
    assert n_layers >= 1 and params[-1][0].shape[0] == 1

    # ---- batch tiling -------------------------------------------------------
    block_batch = _round_up(max(int(block_batch), _LANE), _LANE)
    lane_batch = _round_up(batch, _LANE)
    # v7x megacore: keep >= 2 grid steps whenever batch spans more than one
    # 128-lane tile, so ("parallel",) can actually split across both TCs.
    two_core_cap = _round_up(_cdiv(lane_batch, 2), _LANE) if lane_batch > _LANE else _LANE
    tile_b = min(block_batch, lane_batch, two_core_cap)
    num_tiles = _cdiv(batch, tile_b)
    padded_batch = num_tiles * tile_b        # only the OUTPUT allocation is padded

    # ---- operands / BlockSpecs ---------------------------------------------
    # Deepen the activation pipeline when the grid is deep enough to benefit.
    x_buffers = min(3, max(2, num_tiles))
    operands = [x]
    in_specs = [pl.BlockSpec((tile_b, input_dim), lambda i: (i, 0),
                             pipeline_mode=pl.Buffered(x_buffers))]
    for li, (w, b) in enumerate(params):
        last = (li == n_layers - 1)
        if last and n_layers > 1:
            w_op = jnp.asarray(w).reshape(-1, 1).astype(jnp.float32)   # (h_last, 1) VPU path
        elif last:
            w_op = jnp.asarray(w).astype(jnp.float32)                  # (1, input_dim)
        else:
            w_op = jnp.asarray(w).astype(compute_dtype)                # (out, in) MXU path
        b_op = jnp.asarray(b).reshape(-1, 1).astype(jnp.float32)       # (out, 1)
        operands += [w_op, b_op]
        # Full-array blocks with constant index_maps: weights/biases stay
        # VMEM-resident across all batch tiles (no re-DMA per grid step).
        # NOTE: at 32-wide layers their default double-buffering is irrelevant;
        # for very large hidden dims on v7x (64 MiB VMEM) add
        # pipeline_mode=pl.Buffered(1) here to halve weight residency.
        in_specs += [pl.BlockSpec(w_op.shape, lambda i: (0, 0)),
                     pl.BlockSpec(b_op.shape, lambda i: (0, 0))]

    # Advisory cost estimate so XLA schedules this short custom call sensibly.
    flops = 2 * batch * sum(int(w.shape[0]) * int(w.shape[1]) for w, _ in params)
    bytes_accessed = (int(x.size) * x.dtype.itemsize
                      + sum(int(op.size) * op.dtype.itemsize for op in operands[1:])
                      + padded_batch * 4)
    cost = pl.CostEstimate(flops=flops, transcendentals=0,
                           bytes_accessed=int(bytes_accessed))

    kernel = functools.partial(_regressor_kernel, n_layers=n_layers, precision=precision)

    out = pl.pallas_call(
        kernel,
        out_shape=jax.ShapeDtypeStruct((1, padded_batch), jnp.float32),
        grid=(num_tiles,),
        in_specs=in_specs,
        out_specs=pl.BlockSpec((1, tile_b), lambda i: (0, i)),
        compiler_params=pltpu.CompilerParams(
            # Batch tiles are independent -> shard across v7x's 2 TensorCores
            # (harmless on v5e/v6e).
            dimension_semantics=("parallel",),
            # Explicit scoped-VMEM limit, well below every generation's physical
            # VMEM (v7x has only 64 MiB).
            vmem_limit_bytes=vmem_limit_bytes,
        ),
        cost_estimate=cost,
    )(*operands)

    # Match the PyTorch module's (batch, 1) output.  If the callsite can take a
    # flat (batch,) vector, returning out[0, :batch] directly skips one relayout.
    return out[0, :batch].reshape(batch, 1)


def init_params(key, input_dimension, hidden_dims):
    """PyTorch-style (uniform +/- 1/sqrt(fan_in)) init, PyTorch weight layout (out, in)."""
    dims = [input_dimension] + list(hidden_dims) + [1]
    params = []
    for d_in, d_out in zip(dims[:-1], dims[1:]):
        key, kw, kb = jax.random.split(key, 3)
        bound = 1.0 / (d_in ** 0.5)
        w = jax.random.uniform(kw, (d_out, d_in), jnp.float32, -bound, bound)
        b = jax.random.uniform(kb, (d_out,), jnp.float32, -bound, bound)
        params.append((w, b))
    return params


def regressor_reference(x, params):
    """Pure-JAX reference matching the PyTorch f32 forward semantics."""
    h = x
    for i, (w, b) in enumerate(params):
        h = jnp.dot(h, w.T, precision=jax.lax.Precision.HIGHEST) + b
        if i < len(params) - 1:
            h = jnp.maximum(h, 0.0)
    return h


if __name__ == "__main__":
    key = jax.random.PRNGKey(0)
    key, kx1, kx2 = jax.random.split(key, 3)

    input_dimension = 32
    hidden_dims = [32, 32]
    params = init_params(key, input_dimension, hidden_dims)

    # Small batch (typical module use): single tile, masked partial reads past batch.
    x_small = jax.random.normal(kx1, (8, input_dimension), dtype=jnp.float32)
    ref_small = regressor_reference(x_small, params)

    # Default path: bf16 MXU streaming, f32 accumulation / epilogue.
    out_small = jax.block_until_ready(regressor_forward(x_small, params))
    assert out_small.shape == (8, 1)
    assert jnp.allclose(out_small, ref_small, atol=5e-2, rtol=5e-2)

    # Non-aligned batch: default fat tile + v7x two-core cap -> 2-step grid,
    # partial last tile, f32 MXU path (tight-ish tolerance vs HIGHEST reference).
    x_big = jax.random.normal(kx2, (300, input_dimension), dtype=jnp.float32)
    ref_big = regressor_reference(x_big, params)

    out_big_f32 = jax.block_until_ready(
        regressor_forward(x_big, params, compute_dtype=jnp.float32))
    assert out_big_f32.shape == (300, 1)
    assert jnp.allclose(out_big_f32, ref_big, atol=2e-3, rtol=2e-3)

    # Narrow tile override: exercises a 3-step grid + Buffered(3) input pipeline,
    # bf16 default compute.
    out_big_bf16 = jax.block_until_ready(
        regressor_forward(x_big, params, block_batch=128))
    assert out_big_bf16.shape == (300, 1)
    assert jnp.allclose(out_big_bf16, ref_big, atol=5e-2, rtol=5e-2)

    print("KERNEL_OK")
</pallas_src>

<mosaic_0001>
module attributes {stable_mosaic.version = 11 : i64} {
  func.func @_regressor_kernel(%arg0: i32, %arg1: memref<128x32xf32, #tpu.memory_space<vmem>>, %arg2: memref<32x32xbf16, #tpu.memory_space<vmem>>, %arg3: memref<32x1xf32, #tpu.memory_space<vmem>>, %arg4: memref<32x32xbf16, #tpu.memory_space<vmem>>, %arg5: memref<32x1xf32, #tpu.memory_space<vmem>>, %arg6: memref<32x1xf32, #tpu.memory_space<vmem>>, %arg7: memref<1x1xf32, #tpu.memory_space<vmem>>, %arg8: memref<1x128xf32, #tpu.memory_space<vmem>>) attributes {dimension_semantics = [#tpu.dimension_semantics<parallel>], iteration_bounds = array<i64: 1>, scalar_prefetch = 0 : i64, scratch_operands = 0 : i64, tpu.core_type = #tpu.core_type<tc>, window_params = [{pipeline_mode = #tpu.pipeline_mode<double_buffered>, transform_indices = @transform_0, window_bounds = array<i64: 128, 32>}, {pipeline_mode = #tpu.pipeline_mode<synchronous>, transform_indices = @transform_1, window_bounds = array<i64: 32, 32>}, {pipeline_mode = #tpu.pipeline_mode<synchronous>, transform_indices = @transform_2, window_bounds = array<i64: 32, 1>}, {pipeline_mode = #tpu.pipeline_mode<synchronous>, transform_indices = @transform_3, window_bounds = array<i64: 32, 32>}, {pipeline_mode = #tpu.pipeline_mode<synchronous>, transform_indices = @transform_4, window_bounds = array<i64: 32, 1>}, {pipeline_mode = #tpu.pipeline_mode<synchronous>, transform_indices = @transform_5, window_bounds = array<i64: 32, 1>}, {pipeline_mode = #tpu.pipeline_mode<synchronous>, transform_indices = @transform_6, window_bounds = array<i64: 1, 1>}, {transform_indices = @transform_7, window_bounds = array<i64: 1, 128>}]} {
    %c0 = arith.constant 0 : index
    %c0_0 = arith.constant 0 : index
    %0 = vector.load %arg1[%c0, %c0_0] : memref<128x32xf32, #tpu.memory_space<vmem>>, vector<128x32xf32>
    %c0_1 = arith.constant 0 : index
    %c0_2 = arith.constant 0 : index
    %1 = vector.load %arg2[%c0_1, %c0_2] : memref<32x32xbf16, #tpu.memory_space<vmem>>, vector<32x32xbf16>
    %c0_3 = arith.constant 0 : index
    %c0_4 = arith.constant 0 : index
    %2 = vector.load %arg3[%c0_3, %c0_4] : memref<32x1xf32, #tpu.memory_space<vmem>>, vector<32x1xf32>
    %3 = arith.truncf %0 : vector<128x32xf32> to vector<128x32xbf16>
    %cst = arith.constant dense<0.000000e+00> : vector<32x128xf32>
    %4 = tpu.matmul %1, %3, %cst {dimension_numbers = #tpu.dot_dimension_numbers<[1], [1], [0], [0], [0, 0, 1, 0], [], []>} : vector<32x32xbf16>, vector<128x32xbf16>, vector<32x128xf32> -> vector<32x128xf32>
    %5 = vector.broadcast %2 : vector<32x1xf32> to vector<32x128xf32>
    %6 = arith.addf %4, %5 : vector<32x128xf32>
    %cst_5 = arith.constant 0.000000e+00 : f32
    %7 = vector.broadcast %cst_5 : f32 to vector<32x128xf32>
    %8 = arith.maximumf %6, %7 : vector<32x128xf32>
    %c0_6 = arith.constant 0 : index
    %c0_7 = arith.constant 0 : index
    %9 = vector.load %arg4[%c0_6, %c0_7] : memref<32x32xbf16, #tpu.memory_space<vmem>>, vector<32x32xbf16>
    %c0_8 = arith.constant 0 : index
    %c0_9 = arith.constant 0 : index
    %10 = vector.load %arg5[%c0_8, %c0_9] : memref<32x1xf32, #tpu.memory_space<vmem>>, vector<32x1xf32>
    %11 = arith.truncf %8 : vector<32x128xf32> to vector<32x128xbf16>
    %cst_10 = arith.constant dense<0.000000e+00> : vector<32x128xf32>
    %12 = tpu.matmul %9, %11, %cst_10 {dimension_numbers = #tpu.dot_dimension_numbers<[1], [0], [0], [1], [0, 0, 1, 1], [], []>} : vector<32x32xbf16>, vector<32x128xbf16>, vector<32x128xf32> -> vector<32x128xf32>
    %13 = vector.broadcast %10 : vector<32x1xf32> to vector<32x128xf32>
    %14 = arith.addf %12, %13 : vector<32x128xf32>
    %cst_11 = arith.constant 0.000000e+00 : f32
    %15 = vector.broadcast %cst_11 : f32 to vector<32x128xf32>
    %16 = arith.maximumf %14, %15 : vector<32x128xf32>
    %c0_12 = arith.constant 0 : index
    %c0_13 = arith.constant 0 : index
    %17 = vector.load %arg6[%c0_12, %c0_13] : memref<32x1xf32, #tpu.memory_space<vmem>>, vector<32x1xf32>
    %c0_14 = arith.constant 0 : index
    %c0_15 = arith.constant 0 : index
    %18 = vector.load %arg7[%c0_14, %c0_15] : memref<1x1xf32, #tpu.memory_space<vmem>>, vector<1x1xf32>
    %19 = vector.broadcast %17 : vector<32x1xf32> to vector<32x128xf32>
    %20 = arith.mulf %16, %19 : vector<32x128xf32>
    %cst_16 = arith.constant dense<0.000000e+00> : vector<128xf32>
    %21 = vector.multi_reduction <add>, %20, %cst_16 [0] : vector<32x128xf32> to vector<128xf32>
    %22 = vector.shape_cast %21 : vector<128xf32> to vector<1x128xf32>
    %23 = vector.broadcast %18 : vector<1x1xf32> to vector<1x128xf32>
    %24 = arith.addf %22, %23 : vector<1x128xf32>
    %c0_17 = arith.constant 0 : index
    %c0_18 = arith.constant 0 : index
    %25 = vector.load %arg8[%c0_17, %c0_18] : memref<1x128xf32, #tpu.memory_space<vmem>>, vector<1x128xf32>
    tpu.vector_store %arg8[%c0_17, %c0_18], %24 {strides = array<i32>} : memref<1x128xf32, #tpu.memory_space<vmem>>, vector<1x128xf32>,
    return
  }
  func.func @transform_0(%arg0: i32) -> (i32, i32) {
    %c0_i32 = arith.constant 0 : i32
    %c0_i32_0 = arith.constant 0 : i32
    return %arg0, %c0_i32 : i32, i32
  }
  func.func @transform_1(%arg0: i32) -> (i32, i32) {
    %c0_i32 = arith.constant 0 : i32
    %c0_i32_0 = arith.constant 0 : i32
    %c0_i32_1 = arith.constant 0 : i32
    return %c0_i32, %c0_i32_0 : i32, i32
  }
  func.func @transform_2(%arg0: i32) -> (i32, i32) {
    %c0_i32 = arith.constant 0 : i32
    %c0_i32_0 = arith.constant 0 : i32
    %c0_i32_1 = arith.constant 0 : i32
    return %c0_i32, %c0_i32_0 : i32, i32
  }
  func.func @transform_3(%arg0: i32) -> (i32, i32) {
    %c0_i32 = arith.constant 0 : i32
    %c0_i32_0 = arith.constant 0 : i32
    %c0_i32_1 = arith.constant 0 : i32
    return %c0_i32, %c0_i32_0 : i32, i32
  }
  func.func @transform_4(%arg0: i32) -> (i32, i32) {
    %c0_i32 = arith.constant 0 : i32
    %c0_i32_0 = arith.constant 0 : i32
    %c0_i32_1 = arith.constant 0 : i32
    return %c0_i32, %c0_i32_0 : i32, i32
  }
  func.func @transform_5(%arg0: i32) -> (i32, i32) {
    %c0_i32 = arith.constant 0 : i32
    %c0_i32_0 = arith.constant 0 : i32
    %c0_i32_1 = arith.constant 0 : i32
    return %c0_i32, %c0_i32_0 : i32, i32
  }
  func.func @transform_6(%arg0: i32) -> (i32, i32) {
    %c0_i32 = arith.constant 0 : i32
    %c0_i32_0 = arith.constant 0 : i32
    %c0_i32_1 = arith.constant 0 : i32
    return %c0_i32, %c0_i32_0 : i32, i32
  }
  func.func @transform_7(%arg0: i32) -> (i32, i32) {
    %c0_i32 = arith.constant 0 : i32
    %c0_i32_0 = arith.constant 0 : i32
    return %c0_i32, %arg0 : i32, i32
  }
}

</mosaic_0001>

<bundles_post_ra>
// kernel: tpu_custom_call.1
= control target key start
LH: loop header
LB: loop body
LE: loop exit
PB: predicated region body
PF: predicated region fallthrough
CT: control target
= control target key end

     0   :  { %s601_s0 = inlined_call_operand.vmem [shape: f32[8,32], index: 0, kind: input, shape index: {}]   ;;  %s602_s1 = inlined_call_operand.vmem [shape: bf16[32,32], index: 1, kind: input, shape index: {}]   ;;  %s603_s2 = inlined_call_operand.vmem [shape: f32[32,1], index: 2, kind: input, shape index: {}]   ;;  %s604_s3 = inlined_call_operand.vmem [shape: bf16[32,32], index: 3, kind: input, shape index: {}]   ;;  %s605_s4 = inlined_call_operand.vmem [shape: f32[32,1], index: 4, kind: input, shape index: {}]   ;;  %s606_s5 = inlined_call_operand.vmem [shape: f32[32,1], index: 5, kind: input, shape index: {}]   ;;  %s607_s6 = inlined_call_operand.<no memory space> [shape: f32[1,1], index: 6, kind: input, shape index: {}]   ;;  %s608_s7 = inlined_call_operand.hbm [shape: f32[1,128], index: 7, kind: output, shape index: {}]  }
   0x1   :  { %v12_v0 = vstv %s607_s6 }
   0x2   :  { %13 = vst [vmem:[#allocation2] sm:$0x1] %v12_v0 }
   0x3   :  { %v30_v1 = vld [vmem:[%s601_s0] sm:$0xff]  ;;  %v31_v2 = vld [vmem:[%s601_s0 + $0x8] sm:$0xff]  ;;  %vm92_vm0 = vcmask 261120   ;;  %v32_v3 = vld [vmem:[%s601_s0 + $0x10] sm:$0xff]  ;;  %v428_v6 = vmov 0  }
   0x4   :  { %v54_v4 = vpack.c.bf16 %v31_v2, %v30_v1  ;;  %v33_v5 = vld [vmem:[%s601_s0 + $0x18] sm:$0xff]  ;;  %398 = vset.pattern.permute.xlu0 %v428_v6  ;;  %399 = vset.pattern.permute.xlu1 %v428_v6  ;;  %v34_v9 = vld [vmem:[%s601_s0 + $0x20] sm:$0xff]  ;;  %v35_v10 = vld [vmem:[%s601_s0 + $0x28] sm:$0xff] }
   0x5   :  { %v55_v7 = vpack.c.bf16 %v33_v5, %v32_v3  ;;  %v400_v11 = vld [vmem:[%s602_s1] sm:$0xff]   ;;  %v52_v13 = vld [vmem:[%s603_s2 + $0x10] sm:$0xff]  ;;  %v56_v15 = vpack.c.bf16 %v35_v10, %v34_v9  ;;  %v51_v16 = vld [vmem:[%s603_s2 + $0x8] sm:$0xff] }
   0x6   :  { %388 = vmatprep.subr.msk.bf16.mxu0 %vm92_vm0, %v54_v4  ;;  %v100_v8 = vsel %vm92_vm0, %v54_v4, 0  ;;  %v50_v12 = vld [vmem:[%s603_s2] sm:$0xff]  ;;  %376 = vmatprep.mubr.msk.bf16.mxu0 %vm92_vm0, %v400_v11  ;;  %v53_v17 = vld [vmem:[%s603_s2 + $0x18] sm:$0xff] }
   0x7   :  { %361 = vmatpush3.bf16.xpose.msra.mxu0 %v100_v8  ;;  %64 = vperm.xlu0 %398, %v50_v12   ;;  %v103_v14 = vsel %vm92_vm0, %v55_v7, 0  ;;  %v180_v18 = vld [vmem:[%s605_s4] sm:$0xff] }
   0x8   :  { %389 = vmatprep.subr.msk.bf16.mxu0 %vm92_vm0, %v55_v7  ;;  %74 = vperm.xlu1 %399, %v52_v13  }
   0xb   :  { %69 = vperm.xlu0 %398, %v51_v16  }
   0xc   :  { %79 = vperm.xlu1 %399, %v53_v17  }
   0xf   :  { %363 = vmatpush3.bf16.xpose.msra.mxu0 %v103_v14 }
  0x10   :  { %390 = vmatprep.subr.msk.bf16.mxu0 %vm92_vm0, %v56_v15 }
  0x11   :  { %14 = vsyncpa [#allocation4], 0  ;;  %v36_v19 = vld [vmem:[%s601_s0 + $0x30] sm:$0xff]  ;;  %v37_v20 = vld [vmem:[%s601_s0 + $0x38] sm:$0xff]  ;;  %188 = vperm.xlu0 %398, %v180_v18   ;;  %v106_v22 = vsel %vm92_vm0, %v56_v15, 0 }
  0x12   :  { %v181_v21 = vld [vmem:[%s605_s4 + $0x8] sm:$0xff]  ;;  %v57_v23 = vpack.c.bf16 %v37_v20, %v36_v19  ;;  %v182_v24 = vld [vmem:[%s605_s4 + $0x10] sm:$0xff]  ;;  %v183_v25 = vld [vmem:[%s605_s4 + $0x18] sm:$0xff] }
  0x13   :  { %193 = vperm.xlu1 %399, %v181_v21   ;;  %v275_v26 = vld [vmem:[%s606_s5] sm:$0xff]  ;;  %v39_v28 = vld [vmem:[%s601_s0 + $0x48] sm:$0xff]  ;;  %v277_v32 = vld [vmem:[%s606_s5 + $0x10] sm:$0xff] }
  0x14   :  { %v38_v27 = vld [vmem:[%s601_s0 + $0x40] sm:$0xff]  ;;  %v276_v29 = vld [vmem:[%s606_s5 + $0x8] sm:$0xff]  ;;  %v109_v30 = vsel %vm92_vm0, %v57_v23, 0  ;;  %v278_v33 = vld [vmem:[%s606_s5 + $0x18] sm:$0xff] }
  0x15   :  { %198 = vperm.xlu0 %398, %v182_v24   ;;  %v58_v31 = vpack.c.bf16 %v39_v28, %v38_v27  ;;  %v279_v34 = vld [vmem:[#allocation2] sm:$0x1]  ;;  %v40_v35 = vld [vmem:[%s601_s0 + $0x50] sm:$0xff]  ;;  %v41_v36 = vld [vmem:[%s601_s0 + $0x58] sm:$0xff] }
  0x16   :  { %v59_v38 = vpack.c.bf16 %v41_v36, %v40_v35  ;;  %v42_v39 = vld [vmem:[%s601_s0 + $0x60] sm:$0xff]  ;;  %v43_v40 = vld [vmem:[%s601_s0 + $0x68] sm:$0xff]  ;;  %v44_v43 = vld [vmem:[%s601_s0 + $0x70] sm:$0xff] }
  0x17   :  { %365 = vmatpush3.bf16.xpose.msra.mxu0 %v106_v22  ;;  %203 = vperm.xlu1 %399, %v183_v25   ;;  %v112_v37 = vsel %vm92_vm0, %v58_v31, 0  ;;  %v60_v42 = vpack.c.bf16 %v43_v40, %v42_v39  ;;  %v45_v44 = vld [vmem:[%s601_s0 + $0x78] sm:$0xff]  ;;  %v401_v48 = vld [vmem:[%s602_s1 + $0x8] sm:$0xff]   ;;  %v402_v49 = vld [vmem:[%s604_s3] sm:$0xff]  }
  0x18   :  { %391 = vmatprep.subr.msk.bf16.mxu0 %vm92_vm0, %v57_v23  ;;  %v115_v41 = vsel %vm92_vm0, %v59_v38, 0  ;;  %v61_v46 = vpack.c.bf16 %v45_v44, %v44_v43  ;;  %384 = vmatprep.mubr.msk.bf16.mxu1 %vm92_vm0, %v402_v49  ;;  %v403_v4 = vld [vmem:[%s604_s3 + $0x8] sm:$0xff]   ;;  %s429_s3 = smov [#allocation3]  }
  0x19   :  { %282 = vperm.xlu0 %398, %v275_v26   ;;  %v118_v45 = vsel %vm92_vm0, %v60_v42, 0  ;;  %s330_s12 = sshll.u32 %s429_s3, 4  ;;  %s331_s12 = int_to_ptr.vmem [resolvable:$true] %s330_s12 }
  0x1a   :  { %v121_v47 = vsel %vm92_vm0, %v61_v46, 0  ;;  %s404_s13 = scalar_lea.vmem %s331_s12, 16  ;;  %s408_s14 = scalar_lea.vmem %s331_s12, 32 }
  0x1b   :  { %287 = vperm.xlu1 %399, %v276_v29   ;;  %p405_p0 = scmp.ne.s32.totalorder %s331_s12, %s404_s13  ;;  %p409_p1 = scmp.lt.s32.totalorder %s331_s12, %s331_s12 }
  0x1c   :  { %p410_p2 = scmp.lt.s32.totalorder %s408_s14, %s404_s13 }
  0x1d   :  { %292 = vperm.xlu0 %398, %v277_v32  }
  0x1e   :  { %p411_p3 = por %p410_p2, %p409_p1 }
  0x1f   :  { %367 = vmatpush3.bf16.xpose.msra.mxu0 %v109_v30  ;;  %297 = vperm.xlu1 %399, %v278_v33  }
  0x20   :  { %392 = vmatprep.subr.msk.bf16.mxu0 %vm92_vm0, %v58_v31  ;;  %v318_v31 = vlaneseq  ;;  %p412_p4 = pnand %p411_p3, %p405_p0 }
  0x21   :  { %315 = vperm.xlu0 %398, %v279_v34  }
  0x22   :  { %v319_v34 = vshrl.u32 %v318_v31, 7 }
  0x27   :  { %369 = vmatpush3.bf16.xpose.msra.mxu0 %v112_v37  ;;  %v320_v37 = vsub.s32 0, %v319_v34 }
  0x28   :  { %393 = vmatprep.subr.msk.bf16.mxu0 %vm92_vm0, %v59_v38 }
  0x2f   :  { %371 = vmatpush3.bf16.xpose.msra.mxu0 %v115_v41 }
  0x30   :  { %394 = vmatprep.subr.msk.bf16.mxu0 %vm92_vm0, %v60_v42 }
  0x37   :  { %373 = vmatpush3.bf16.xpose.msra.mxu0 %v118_v45 }
  0x38   :  { %395 = vmatprep.subr.msk.bf16.mxu0 %vm92_vm0, %v61_v46 }
  0x3f   :  { %375 = vmatpush3.bf16.xpose.msra.mxu0 %v121_v47 }
  0x46   :  { %377 = vmatmul.mubr.msk.bf16.vlgmr.msra.gmra.mrb[0].mxu0 %vm92_vm0, %v401_v48 }
  0x86   :  { %v65_v51 = vpop.permute.xlu0 %64 }
  0x87   :  { %v75_v50 = vpop.permute.xlu1 %74 }
  0x8a   :  { %v70_v58 = vpop.permute.xlu0 %69 }
  0x8b   :  { %v80_v55 = vpop.permute.xlu1 %79 }
  0x90   :  { %v189_v5 = vpop.permute.xlu0 %188 }
  0x92   :  { %v194_v6 = vpop.permute.xlu1 %193 }
  0x94   :  { %v199_v7 = vpop.permute.xlu0 %198 }
  0x96   :  { %v204_v8 = vpop.permute.xlu1 %203 }
  0x98   :  { %v283_v14 = vpop.permute.xlu0 %282 }
  0x9a   :  { %v288_v19 = vpop.permute.xlu1 %287 }
  0x9c   :  { %v293_v25 = vpop.permute.xlu0 %292 }
  0x9e   :  { %v298_v28 = vpop.permute.xlu1 %297 }
  0xa0   :  { %v316_v39 = vpop.permute.xlu0 %315 }
  0xa1   :  { %v321_v41 = vrot.slane %v316_v39, %v320_v37 }
 0x119   :  { %v378_v52 = vpop.f32.mrb[0].mxu0 }
 0x11a   :  { %v166_v53 = vadd.f32 %v378_v52, %v75_v50  ;;  %v157_v54 = vpop.f32.mrb[1].mxu0 }
 0x11b   :  { %v158_v56 = vadd.f32 %v157_v54, %v65_v51  ;;  %v379_v57 = vpop.f32.mrb[2].mxu0 }
 0x11c   :  { %v169_v59 = vadd.f32 %v379_v57, %v80_v55  ;;  %v160_v60 = vpop.f32.mrb[3].mxu0  ;;  %v174_v62 = vmax.f32 %v166_v53, 0.0 }
 0x11d   :  { %v161_v61 = vadd.f32 %v160_v60, %v70_v58  ;;  %v172_v0 = vmax.f32 %v158_v56, 0.0 }
 0x11e   :  { %v175_v63 = vmax.f32 %v169_v59, 0.0 }
 0x11f   :  { %v173_v1 = vmax.f32 %v161_v61, 0.0 }
 0x120   :  { %v185_v2 = vpack.c.bf16 %v175_v63, %v174_v62 }
 0x121   :  { %v184_v3 = vpack.c.bf16 %v173_v1, %v172_v0 }
 0x123   :  { %380 = vmatprep.subr.bf16.mxu1 %v184_v3 }
 0x124   :  { %381 = vmatpush3.bf16.msra.mxu1 %v184_v3 }
 0x125   :  { %382 = vmatprep.subr.bf16.mxu1 %v185_v2 }
 0x128   :  { %383 = vmatpush3.bf16.msra.mxu1 %v185_v2 }
 0x12b   :  { %385 = vmatmul.mubr.msk.bf16.vlgmr.msra.gmra.mrb[0].mxu1 %vm92_vm0, %v403_v4 }
 0x1fe   :  { %v386_v9 = vpop.f32.mrb[0].mxu1 }
 0x1ff   :  { %v256_v10 = vpop.f32.mrb[1].mxu1  ;;  %v265_v11 = vadd.f32 %v386_v9, %v199_v7 }
 0x200   :  { %v257_v12 = vadd.f32 %v256_v10, %v189_v5  ;;  %v387_v13 = vpop.f32.mrb[2].mxu1 }
 0x201   :  { %v259_v15 = vpop.f32.mrb[3].mxu1  ;;  %v268_v17 = vadd.f32 %v387_v13, %v204_v8  ;;  %v273_v20 = vmax.f32 %v265_v11, 0.0 }
 0x202   :  { %v271_v16 = vmax.f32 %v257_v12, 0.0  ;;  %v260_v18 = vadd.f32 %v259_v15, %v194_v6 }
 0x203   :  { %v274_v23 = vmax.f32 %v268_v17, 0.0  ;;  %v302_v26 = vmul.f32 %v293_v25, %v273_v20 }
 0x204   :  { %v272_v21 = vmax.f32 %v260_v18, 0.0  ;;  %v300_v22 = vmul.f32 %v283_v14, %v271_v16 }
 0x205   :  { %v303_v29 = vmul.f32 %v298_v28, %v274_v23 }
 0x206   :  { %v301_v24 = vmul.f32 %v288_v19, %v272_v21 }
 0x208   :  { %v304_v27 = vadd.f32 %v301_v24, %v300_v22 }
 0x20a   :  { %v305_v30 = vadd.f32 %v304_v27, %v302_v26 }
 0x20c   :  { %v306_v32 = vadd.f32 %v305_v30, %v303_v29 }
 0x20e   :  { %v307_v33 = vrot.slane %v306_v32, 4 }
 0x210   :  { %v308_v35 = vadd.f32 %v307_v33, %v306_v32 }
 0x212   :  { %v309_v36 = vrot.slane %v308_v35, 2 }
 0x214   :  { %v310_v38 = vadd.f32 %v309_v36, %v308_v35 }
 0x216   :  { %v311_v40 = vrot.slane %v310_v38, 1 }
 0x218   :  { %v312_v42 = vadd.f32 %v311_v40, %v310_v38 }
 0x21a   :  { %v322_v43 = vadd.f32 %v321_v41, %v312_v42 }
 0x21c   :  { %323 = vst [vmem:[#allocation3] sm:$0x1] %v322_v43 }
 0x21d   :  { %415 = shalt.err (!%p412_p4)
}
 0x21e   :  { %s416_s17 = scalar_lea.hbm %s608_s7, 16 }
 0x21f   :  { %p417_p5 = scmp.ne.s32.totalorder %s608_s7, %s416_s17  ;;  %p420_p6 = scmp.lt.u32.totalorder %s416_s17, %s608_s7 }
 0x221   :  { %p422_p7 = pnand %p420_p6, %p417_p5 }
 0x223   :  { %425 = shalt.err (!%p422_p7)
}
 0x224   :  { %333 = dma.vmem_to_hbm [thread:$0]  %s331_s12, 16, %s608_s7, [#allocation4]  }
 0x225   :  { %426 = dma.done.wait [#allocation4], 16  }
 0x226   :  { %427 = vsyncadd [#allocation4], 4294967280 }
 0x227   :  { %337 = vsyncpa [#allocation4], 1 }

</bundles_post_ra>
